<compile_context>
chip_gen: v7x
topology: tpu7x:2x2x1
jax: 0.10.0
libtpu: 0.0.40
codegen_flags: <defaults>
</compile_context>

<pallas_src>
import jax
import jax.numpy as jnp
from jax.experimental import pallas as pl
from jax.experimental.pallas import tpu as pltpu

_LANES = 128
_SUBLANES = 8


def _drop_path_kernel(scale_ref, x_ref, o_ref):
    """scale_ref: (1, 1, 1) f32 per-sample scale in {0, 1/keep_prob}.
    x_ref / o_ref: (1, block_r, Fc) dense tiles of the folded input."""
    # bf16/fp8 inputs promote to f32 for the multiply, cast back on store.
    o_ref[...] = (x_ref[...] * scale_ref[...]).astype(o_ref.dtype)


def _round_up(x, m):
    return ((x + m - 1) // m) * m


def _cdiv(a, b):
    return -(-a // b)


def _choose_layout(B, F, itemsize, target_bytes, min_grid_steps):
    """Fold F into (R, Fc) with Fc % 128 == 0 and pick a sublane-dense row
    block ~target_bytes.  Returns (Fc, R, block_r, vmem_limit_bytes) or None
    when the feature size cannot be made lane-dense."""
    Fc = None
    for cand in (512, 1024, 256, 128):
        if F % cand == 0:
            Fc = cand
            break
    if Fc is None:
        return None
    R = F // Fc

    # Row block: multiple of 8 sublanes (or the full extent), ~target_bytes.
    target_rows = max(_SUBLANES,
                      (target_bytes // (Fc * itemsize)) // _SUBLANES * _SUBLANES)
    block_r = R if target_rows >= R else target_rows

    # Keep >= min_grid_steps so both v7x cores get work and DMA overlaps compute.
    while B * _cdiv(R, block_r) < min_grid_steps and block_r > _SUBLANES:
        new_r = max(_SUBLANES, _round_up(block_r // 2, _SUBLANES))
        if new_r >= block_r:
            break
        block_r = new_r

    # Explicit VMEM budget from the padded footprint:
    #   (in + out) x double buffering, plus slack for the tiny scale blocks.
    padded_rows = _round_up(block_r, _SUBLANES)
    tile_bytes = padded_rows * Fc * itemsize
    needed = 2 * 2 * tile_bytes
    vmem_limit = int(min(48 * 1024 * 1024,
                         max(needed + needed // 2 + (1 << 20),
                             16 * 1024 * 1024)))
    return Fc, R, block_r, vmem_limit


def drop_path(x, key, drop_prob=0.1, training=True, *,
              min_pallas_elems=1 << 14, target_bytes=4 << 20,
              min_grid_steps=4, donate=False):
    """JAX/Pallas equivalent of the PyTorch drop_path function."""
    if drop_prob == 0.0 or not training:
        return x
    keep_prob = 1.0 - float(drop_prob)
    B = x.shape[0]

    # Per-sample Bernoulli(keep_prob) scale, kept in float32 (avoids
    # quantizing the threshold / reciprocal for low-precision inputs).
    u = jax.random.uniform(key, (B,), dtype=jnp.float32)
    scale = jnp.floor(keep_prob + u) * (1.0 / keep_prob)   # (B,), in {0, 1/kp}

    F = 1
    for d in x.shape[1:]:
        F *= int(d)

    itemsize = jnp.dtype(x.dtype).itemsize
    layout = None
    if B * F >= min_pallas_elems:
        layout = _choose_layout(B, F, itemsize, target_bytes, min_grid_steps)

    if layout is None:
        # Tiny tensors, or F not a multiple of 128: launch/pipeline overhead
        # dominates (or the layout would be lane-sparse); let XLA fuse it.
        bshape = (B,) + (1,) * (x.ndim - 1)
        return (x * scale.reshape(bshape)).astype(x.dtype)

    Fc, R, block_r, vmem_limit = layout
    x3 = x.reshape(B, R, Fc)            # sublane/lane-dense folded view
    scale3 = scale.reshape(B, 1, 1)
    grid = (B, _cdiv(R, block_r))

    out3 = pl.pallas_call(
        _drop_path_kernel,
        out_shape=jax.ShapeDtypeStruct((B, R, Fc), x.dtype),
        grid=grid,
        in_specs=[
            pl.BlockSpec((1, 1, 1), lambda i, j: (i, 0, 0)),          # scale
            pl.BlockSpec((1, block_r, Fc), lambda i, j: (i, j, 0)),   # x tile
        ],
        out_specs=pl.BlockSpec((1, block_r, Fc), lambda i, j: (i, j, 0)),
        compiler_params=pltpu.CompilerParams(
            dimension_semantics=("parallel", "parallel"),
            vmem_limit_bytes=vmem_limit,
        ),
        input_output_aliases=({1: 0} if donate else {}),
    )(scale3, x3)
    return out3.reshape(x.shape)


class DropPath:
    """Mirror of the PyTorch DropPath module (no parameters)."""

    def __init__(self, drop_prob=0.1):
        self.drop_prob = drop_prob
        self.training = True

    def __call__(self, x, key):
        return drop_path(x, key, self.drop_prob, self.training)


if __name__ == "__main__":
    key = jax.random.PRNGKey(0)
    xkey, mkey, xkey2 = jax.random.split(key, 3)

    module = DropPath(drop_prob=0.1)
    module.training = True
    keep_prob = 1.0 - module.drop_prob

    def reference(x, rng, B):
        u = jax.random.uniform(rng, (B,), dtype=jnp.float32)
        s = jnp.floor(keep_prob + u) / keep_prob
        return (x * s.reshape((B,) + (1,) * (x.ndim - 1))).astype(x.dtype)

    # Small NCHW-style input; force the Pallas path (min_pallas_elems=0).
    x = jax.random.normal(xkey, (2, 4, 16, 16), dtype=jnp.float32)
    out = jax.block_until_ready(
        drop_path(x, mkey, module.drop_prob, True, min_pallas_elems=0))
    ref = reference(x, mkey, 2)
    assert out.shape == x.shape and out.dtype == x.dtype
    assert jnp.allclose(out, ref, atol=1e-6, rtol=1e-6)

    # Swin-like token layout (B, L, C); also runs the Pallas path
    # (Fc=128, row blocks of 80 -> grid (2, 2), one partial row block).
    x2 = jax.random.normal(xkey2, (2, 196, 96), dtype=jnp.float32)
    out2 = jax.block_until_ready(
        drop_path(x2, mkey, module.drop_prob, True, min_pallas_elems=0))
    ref2 = reference(x2, mkey, 2)
    assert out2.shape == x2.shape
    assert jnp.allclose(out2, ref2, atol=1e-6, rtol=1e-6)

    # Default threshold: tiny tensors take the fused-XLA fallback.
    out_small = jax.block_until_ready(module(x, mkey))
    assert jnp.allclose(out_small, ref, atol=1e-6, rtol=1e-6)

    # Eval mode / drop_prob=0 are identities.
    module.training = False
    assert jnp.array_equal(jax.block_until_ready(module(x, mkey)), x)
    module.training = True
    assert jnp.array_equal(
        jax.block_until_ready(drop_path(x, mkey, 0.0, True)), x)

    print("KERNEL_OK")
</pallas_src>

<mosaic_0001>
module attributes {stable_mosaic.version = 11 : i64} {
  func.func @_drop_path_kernel(%arg0: i32, %arg1: i32, %arg2: memref<1x1x1xf32, #tpu.memory_space<vmem>>, %arg3: memref<1x2x512xf32, #tpu.memory_space<vmem>>, %arg4: memref<1x2x512xf32, #tpu.memory_space<vmem>>) attributes {dimension_semantics = [#tpu.dimension_semantics<parallel>, #tpu.dimension_semantics<parallel>], iteration_bounds = array<i64: 2, 1>, scalar_prefetch = 0 : i64, scratch_operands = 0 : i64, tpu.core_type = #tpu.core_type<tc>, window_params = [{transform_indices = @transform_0, window_bounds = array<i64: 1, 1, 1>}, {transform_indices = @transform_1, window_bounds = array<i64: 1, 2, 512>}, {transform_indices = @transform_2, window_bounds = array<i64: 1, 2, 512>}]} {
    %c0 = arith.constant 0 : index
    %c0_0 = arith.constant 0 : index
    %c0_1 = arith.constant 0 : index
    %0 = vector.load %arg3[%c0, %c0_0, %c0_1] : memref<1x2x512xf32, #tpu.memory_space<vmem>>, vector<1x2x512xf32>
    %c0_2 = arith.constant 0 : index
    %c0_3 = arith.constant 0 : index
    %c0_4 = arith.constant 0 : index
    %1 = vector.load %arg2[%c0_2, %c0_3, %c0_4] : memref<1x1x1xf32, #tpu.memory_space<vmem>>, vector<1x1x1xf32>
    %2 = vector.broadcast %1 : vector<1x1x1xf32> to vector<1x2x512xf32>
    %3 = arith.mulf %0, %2 : vector<1x2x512xf32>
    %c0_5 = arith.constant 0 : index
    %c0_6 = arith.constant 0 : index
    %c0_7 = arith.constant 0 : index
    %4 = vector.load %arg4[%c0_5, %c0_6, %c0_7] : memref<1x2x512xf32, #tpu.memory_space<vmem>>, vector<1x2x512xf32>
    tpu.vector_store %arg4[%c0_5, %c0_6, %c0_7], %3 {strides = array<i32>} : memref<1x2x512xf32, #tpu.memory_space<vmem>>, vector<1x2x512xf32>,
    return
  }
  func.func @transform_0(%arg0: i32, %arg1: i32) -> (i32, i32, i32) {
    %c0_i32 = arith.constant 0 : i32
    %c0_i32_0 = arith.constant 0 : i32
    %c0_i32_1 = arith.constant 0 : i32
    return %arg0, %c0_i32, %c0_i32_0 : i32, i32, i32
  }
  func.func @transform_1(%arg0: i32, %arg1: i32) -> (i32, i32, i32) {
    %c0_i32 = arith.constant 0 : i32
    %c0_i32_0 = arith.constant 0 : i32
    return %arg0, %arg1, %c0_i32 : i32, i32, i32
  }
  func.func @transform_2(%arg0: i32, %arg1: i32) -> (i32, i32, i32) {
    %c0_i32 = arith.constant 0 : i32
    %c0_i32_0 = arith.constant 0 : i32
    return %arg0, %arg1, %c0_i32 : i32, i32, i32
  }
}

</mosaic_0001>

<bundles_post_ra>
// kernel: tpu_custom_call.1
= control target key start
LH: loop header
LB: loop body
LE: loop exit
PB: predicated region body
PF: predicated region fallthrough
CT: control target
= control target key end

     0   :  { %7 = vsyncpa [#allocation3], 0  ;;  %s706_s0 = inlined_call_operand.vmem [shape: f32[2,1,1], index: 0, kind: input, shape index: {}]   ;;  %s707_s1 = inlined_call_operand.hbm [shape: f32[2,2,512], index: 1, kind: input, shape index: {}]   ;;  %s708_s2 = inlined_call_operand.hbm [shape: f32[2,2,512], index: 2, kind: output, shape index: {}]  }
   0x1   :  { %9 = vsyncpa [#allocation3 + $0x1], 0 }
   0x2   :  { %10 = vsyncpa [#allocation4], 0 }
   0x3   :  { %12 = vsyncpa [#allocation4 + $0x1], 0  ;;  %s529_s9 = smov 0   ;;  %s531_s10 = smov 0  }
   0x4   :  { %s533_s11 = smov 0   ;;  %s535_s12 = smov 0  }
   0x5   :  { %s537_s13 = smov 0   ;;  %s539_s14 = smov 0  }
   0x6 LB: > { %s315_s15 = sadd.s32 4294967295, %s509_s14   ;;  %s316_s16 = sadd.s32 4294967294, %s509_s14   ;;  %s509_s14 = sphi %s539_s14, %s18_s14   ;;  %s505_s13 = sphi %s537_s13, %s724_s13   ;;  %s501_s12 = sphi %s535_s12, %s723_s12   ;;  %s497_s11 = sphi %s533_s11, %s722_s11   ;;  %s493_s10 = sphi %s531_s10, %s721_s10   ;;  %s489_s9 = sphi %s529_s9, %s720_s9  }
   0x7   : > { %s30_s17 = sadd.s32 1, %s505_s13  ;;  %s65_s18 = sadd.s32 1, %s497_s11 }
   0x8   : > { %p32_p0 = scmp.ge.s32.totalorder %s30_s17, 2  ;;  %p72_p1 = scmp.ne.s32.totalorder %s497_s11, %s493_s10 }
   0x9   : > { %p73_p2 = scmp.eq.s32.totalorder %s509_s14, 0  ;;  %p78_p3 = scmp.ne.s32.totalorder %s493_s10, %s489_s9 }
   0xa   : > { %s726_s17 = smov (%p32_p0, %s30_s17), 0  ;;  %p79_p5 = scmp.eq.s32.totalorder %s315_s15, 0 }
   0xb   : > { %p570_p4 = por %p73_p2, %p72_p1  ;;  %s60_s20 = ssub.s32 %s505_s13, %s726_s17 }
   0xc   : > { %p104_p6 = scmp.eq.s32.totalorder %s315_s15, 1  ;;  %p63_p7 = scmp.eq.s32.totalorder %s60_s20, 0 }
   0xd   : > { %p576_p8 = por %p79_p5, %p78_p3  ;;  %p110_p10 = scmp.eq.s32.totalorder %s316_s16, 1 }
   0xe   : > { %p580_p9 = por %p104_p6, %p72_p1  ;;  %p345_p13 = scmp.lt.s32.totalorder %s509_s14, 2 }
   0xf   : > { %s585_s23 = scalar_select %p63_p7, %s497_s11, %s65_s18  }
  0x10   : > { %s712_s22 = scalar_select %p580_p9, 1, 0 }
  0x11   : > { %p587_p11 = por %p110_p10, %p78_p3  ;;  %s136_s25 = sand.u32 1, %s497_s11  }
  0x12   : > { %s319_s26 = sshll.u32 %s136_s25, 3  ;;  %s331_s27 = sshll.u32 %s505_s13, 7 }
  0x13   : > { %s713_s24 = scalar_select %p587_p11, 1, 0 }
  0x14   : > { %s598_s30 = scalar_lea.hbm %s707_s1, %s331_s27  ;;  %s140_s3 = scalar_lea.vmem [#allocation2], %s319_s26 }
  0x15   : > { %s150_s4 = sshll.u32 %s140_s3, 4  ;;  %p604_p0 = pnand %p345_p13, %p570_p4  ;;  %s600_s4 = int_to_ptr.vmem [resolvable:$true] %s150_s4 }
  0x16   : > { %s137_s6 = scalar_lea.sflag [#allocation3], %s136_s25  ;;  %s397_s7 = scalar_lea.hbm %s598_s30, 128 }
  0x17   : > { %p398_p3 = scmp.ne.s32.totalorder %s598_s30, %s397_s7  ;;  %p399_p5 = pneg %p604_p0 }
  0x18   : > { %s402_s16 = scalar_lea.hbm %s707_s1, 256  ;;  %p403_p4 = scmp.lt.u32.totalorder %s598_s30, %s707_s1 }
  0x19   : > { %p400_p6 = pnand %p399_p5, %p398_p3  ;;  %p404_p10 = scmp.lt.u32.totalorder %s402_s16, %s397_s7 }
  0x1a   : > { %p406_p12 = scmp.lt.u32.totalorder %s397_s7, %s598_s30 }
  0x1b   : > { %p401_p7 = pneg %p400_p6  ;;  %p405_p13 = por %p404_p10, %p403_p4 }
  0x1d   : > { %p407_p1 = por %p406_p12, %p405_p13 }
  0x1f   : > { %p408_p2 = pnand %p407_p1, %p401_p7 }
  0x21   : > { %411 = shalt.err (!%p408_p2)
}
  0x22   : > { %s412_s20 = scalar_lea.vmem %s600_s4, 128  ;;  %s511_s25 = smov [#allocation2]  }
  0x23   : > { %p413_p3 = scmp.ne.s32.totalorder %s600_s4, %s412_s20  ;;  %s417_s26 = sshll.u32 %s511_s25, 4  ;;  %s418_s26 = int_to_ptr.vmem [resolvable:$false] %s417_s26 }
  0x24   : > { %s419_s27 = scalar_lea.vmem %s418_s26, 256  ;;  %p420_p9 = scmp.lt.s32.totalorder %s600_s4, %s418_s26 }
  0x25   : > { %p415_p6 = pnand %p413_p3, %p399_p5  ;;  %p421_p4 = scmp.lt.s32.totalorder %s419_s27, %s412_s20 }
  0x27   : > { %p416_p11 = pneg %p415_p6  ;;  %p422_p10 = por %p421_p4, %p420_p9 }
  0x29   : > { %p423_p12 = pnand %p422_p10, %p416_p11 }
  0x2b   : > { %426 = shalt.err (!%p423_p12)
}
  0x2c   : > { %340 = dma.hbm_to_vmem [thread:$0]  (!%p604_p0), %s598_s30, 128, %s600_s4, %s137_s6  }
  0x2d   : > { %p715_p1 = scmp.lt.s32.totalorder %s509_s14, 3  ;;  %p716_p2 = scmp.ge.s32.totalorder %s509_s14, 1 }
  0x2f   : > { %p156_p5 = pnand %p716_p2, %p715_p1 }
  0x30   : > { %s640_s28 = sand.u32 (!%p156_p5), 1, %s493_s10  }
  0x31   : > { %159 = sbr.rel (%p156_p5) target bundleno = 207 (0xcf), region = 28  ;;  %s323_s29 = sshll.u32 (!%p156_p5), %s640_s28, 3 }
  0x32   : > { %s162_s3 = scalar_lea.sflag (!%p156_p5), [#allocation3], %s640_s28  ;;  %s165_s7 = scalar_lea.vmem (!%p156_p5), [#allocation2], %s323_s29 }
  0x38   : > { %480 = dma.done.wait (%p576_p8), %s162_s3, 128  }
  0x39   : > { %482 = vsyncadd (%p576_p8), %s162_s3, 4294967168  ;;  %p189_p9 = scmp.lt.s32.totalorder %s501_s12, 1  ;;  %v512_v0 = vmov 0   ;;  %v192_v2 = vld [vmem:[%s165_s7] sm:$0xff]  ;;  %s332_s8 = sshll.u32 %s501_s12, 7 }
  0x3a   : > { %396 = vset.pattern.permute.xlu0 %v512_v0  ;;  %s188_s15 = scalar_lea.vmem [#allocation5], %s323_s29  ;;  %s657_s19 = scalar_lea.hbm %s708_s2, %s332_s8 }
  0x3b   : > { %s190_s30 = scalar_select %p189_p9, %s501_s12, 1 }
  0x3c   : > { %s222_s21 = sshll.u32 %s188_s15, 4  ;;  %s206_s20 = scalar_lea.sflag [#allocation4], %s640_s28  ;;  %s659_s21 = int_to_ptr.vmem [resolvable:$true] %s222_s21 }
  0x3d   : > { %s191_s6 = scalar_lea.vmem %s706_s0, %s190_s30  ;;  %s427_s25 = scalar_lea.vmem %s659_s21, 128 }
  0x3e   : > { %v325_v1 = vld [vmem:[%s191_s6] ss:$0 sm:$0xff]  ;;  %p428_p8 = scmp.ne.s32.totalorder %s659_s21, %s427_s25  ;;  %p717_p11 = scmp.ne.s32.totalorder %s712_s22, 0 }
  0x3f   : > { %200 = vperm.xlu0 %396, %v325_v1   ;;  %s513_s12 = smov [#allocation5]  }
  0x40   : > { %p429_p0 = pnand %p428_p8, %p717_p11  ;;  %s431_s26 = sshll.u32 %s513_s12, 4  ;;  %s432_s26 = int_to_ptr.vmem [resolvable:$false] %s431_s26 }
  0x41   : > { %s433_s27 = scalar_lea.vmem %s432_s26, 256  ;;  %p434_p13 = scmp.lt.s32.totalorder %s659_s21, %s432_s26 }
  0x42   : > { %p430_p7 = pneg %p429_p0  ;;  %p435_p3 = scmp.lt.s32.totalorder %s433_s27, %s427_s25 }
  0x44   : > { %p436_p6 = por %p435_p3, %p434_p13 }
  0x46   : > { %p437_p4 = pnand %p436_p6, %p430_p7 }
  0xbe   : > { %v201_v3 = vpop.permute.xlu0 %200 }
  0xbf   : > { %v203_v4 = vmul.f32 %v201_v3, %v192_v2 }
  0xc1   : > { %204 = vst [vmem:[%s188_s15] sm:$0xff] %v203_v4 }
  0xc2   : > { %440 = shalt.err (!%p437_p4)
}
  0xc3   : > { %s441_s28 = scalar_lea.hbm %s657_s19, 128  ;;  %s445_s7 = scalar_lea.hbm %s708_s2, 256 }
  0xc4   : > { %p442_p10 = scmp.ne.s32.totalorder %s657_s19, %s441_s28  ;;  %p446_p2 = scmp.lt.u32.totalorder %s657_s19, %s708_s2 }
  0xc5   : > { %p447_p5 = scmp.lt.u32.totalorder %s445_s7, %s441_s28  ;;  %p449_p8 = scmp.lt.u32.totalorder %s441_s28, %s657_s19 }
  0xc6   : > { %p443_p12 = pnand %p442_p10, %p717_p11 }
  0xc7   : > { %p448_p9 = por %p447_p5, %p446_p2 }
  0xc8   : > { %p444_p1 = pneg %p443_p12 }
  0xc9   : > { %p450_p0 = por %p449_p8, %p448_p9 }
  0xcb   : > { %p451_p7 = pnand %p450_p0, %p444_p1 }
  0xcd   : > { %454 = shalt.err (!%p451_p7)
}
  0xce   : > { %335 = dma.vmem_to_hbm [thread:$0]  (%p717_p11), %s659_s21, 128, %s657_s19, %s206_s20  }
  0xcf PF: > { %s234_s5 = sand.u32 1, %s489_s9   ;;  %p718_p13 = scmp.ne.s32.totalorder %s713_s24, 0 }
  0xd0   : > { %p719_p3 = scmp.ge.s32.totalorder %s509_s14, 2  ;;  %s235_s6 = scalar_lea.sflag [#allocation4], %s234_s5 }
  0xd2   : > { %p342_p6 = pnand %p719_p3, %p718_p13 }
  0xd4   : > { %484 = dma.done.wait (!%p342_p6), %s235_s6, 128  }
  0xd5   : > { %486 = vsyncadd (!%p342_p6), %s235_s6, 4294967168  ;;  %s18_s14 = sadd.s32 1, %s509_s14   ;;  %s720_s9 = smov %s493_s10 }
  0xd6   : > { %p15_p4 = scmp.ge.s32.totalorder %s18_s14, 4   ;;  %s721_s10 = smov %s497_s11 }
  0xd7   : > { %s722_s11 = smov %s585_s23  ;;  %s723_s12 = smov %s505_s13 }
  0xd8   : > { %s724_s13 = smov %s726_s17  ;;  %17 = sbr.rel (!%p15_p4) target bundleno = 6 (0x6), region = 76 }
  0xdf   :  { %240 = vsyncpa [#allocation3], 1 }
  0xe0   :  { %242 = vsyncpa [#allocation3 + $0x1], 1 }
  0xe1   :  { %243 = vsyncpa [#allocation4], 1 }
  0xe2   :  { %245 = vsyncpa [#allocation4 + $0x1], 1 }

</bundles_post_ra>
